<compile_context>
chip_gen: v7x
topology: tpu7x:2x2x1
jax: 0.10.0
libtpu: 0.0.40
codegen_flags: <defaults>
</compile_context>

<pallas_src>
import jax
import jax.numpy as jnp
from jax import lax
from jax.experimental import pallas as pl
from jax.experimental.pallas import tpu as pltpu

EPS = 1e-12


def _l2n(x):
    # matches EPrompt.l2_normalize: x * rsqrt(max(sum(x^2, -1, keepdim), eps))
    sq = jnp.sum(x * x, axis=-1, keepdims=True)
    return x * lax.rsqrt(jnp.maximum(sq, EPS))


# ---------------------------------------------------------------------------
# Kernel 1: task similarity + majority-vote task selection, all in-kernel.
# (kept in f32 end-to-end: integer outputs must not flip on near-tie similarities)
# ---------------------------------------------------------------------------
def _select_task_kernel(task_ref, cls_ref, major_ref, idx_ref):
    kn = _l2n(task_ref[...].astype(jnp.float32))                      # (T, D)
    qn = _l2n(cls_ref[...].astype(jnp.float32))                       # (B, D)
    # similarity_2 = (key_norm @ x_norm.T).T  ==  contract last dims (no .T / XLU shuffle)
    sim = lax.dot_general(qn, kn, (((1,), (1,)), ((), ())),
                          preferred_element_type=jnp.float32)         # (B, T)
    B, T = sim.shape
    big = float(T)
    col = lax.broadcasted_iota(jnp.int32, (B, T), 1).astype(jnp.float32)
    # per-row first-argmax (torch.topk(k=1) tie-break). Float-equality tie-break is safe because
    # both operands come from the exact same computed values in the same dtype.
    row_max = jnp.max(sim, axis=1, keepdims=True)                     # (B, 1)
    row_arg = jnp.min(jnp.where(sim == row_max, col, big), axis=1, keepdims=True)
    votes = (col == row_arg).astype(jnp.float32)                      # exactly one 1 per row
    counts = jnp.sum(votes, axis=0, keepdims=True)                    # (1, T) vote counts
    # majority vote, smallest task id on ties (torch.unique sorted + topk on counts)
    col1 = lax.broadcasted_iota(jnp.int32, (1, T), 1).astype(jnp.float32)
    cmax = jnp.max(counts, axis=1, keepdims=True)
    major = jnp.min(jnp.where(counts == cmax, col1, big),
                    axis=1, keepdims=True).astype(jnp.int32)          # (1, 1)
    major_ref[...] = major
    idx_ref[...] = jnp.broadcast_to(major, idx_ref.shape)             # (B, top_k)


def select_task(text_features_task, cls_features_task, top_k=1):
    T, D = text_features_task.shape
    B, _ = cls_features_task.shape
    return pl.pallas_call(
        _select_task_kernel,
        out_shape=(jax.ShapeDtypeStruct((1, 1), jnp.int32),
                   jax.ShapeDtypeStruct((B, top_k), jnp.int32)),
        grid=(1,),
        in_specs=[pl.BlockSpec((T, D), lambda i: (0, 0)),
                  pl.BlockSpec((B, D), lambda i: (0, 0))],
        out_specs=(pl.BlockSpec((1, 1), lambda i: (0, 0)),
                   pl.BlockSpec((B, top_k), lambda i: (0, 0))),
        compiler_params=pltpu.CompilerParams(dimension_semantics=("arbitrary",)),
    )(text_features_task, cls_features_task)


# ---------------------------------------------------------------------------
# Kernel 2: fused  mean(seq-tiled) -> l2norm -> class similarity -> compute_multi_prompt,
#           with the group gather done by scalar-prefetch-driven BlockSpecs.
# ---------------------------------------------------------------------------
def _make_main_kernel(N, tn, L, ppt, simw, needs_mask):
    # (a, p') -> (pool row, token half) of the selected (ppt, 2L, D) group, from the row-major
    # reshape(B, 2, ppt, L, H, hd) used by compute_multi_prompt (kv/pool entangled, as in torch).
    two_l = 2 * L
    qv0, hv0 = ppt // 2, ppt % 2              # (a=1, p'=0)
    qv1, hv1 = (ppt + 1) // 2, (ppt + 1) % 2  # (a=1, p'=1)
    inv_n = 1.0 / float(N)

    def kernel(major_ref, x_ref, cls_ref, ep_ref, sim_ref, xnorm_ref, bp_ref, acc_ref):
        del major_ref  # consumed by the index_maps (group gather); not needed in the body
        n = pl.program_id(1)

        @pl.when(n == 0)
        def _init():
            acc_ref[...] = jnp.zeros_like(acc_ref)

        # running sum over the sequence axis; the f32 upcast temp is one (tb, tn, D) tile
        # (accounted for in the VMEM footprint model).
        x = x_ref[...].astype(jnp.float32)                              # (tb, tn, D)
        if needs_mask:
            # last N-block may extend past N: zero out the padded (unspecified) rows
            row = lax.broadcasted_iota(jnp.int32, (x.shape[1], x.shape[2]), 0)
            x = jnp.where((row < (N - n * tn))[None], x, 0.0)
        acc_ref[...] += jnp.sum(x, axis=1)                              # (tb, D)

        @pl.when(n == pl.num_programs(1) - 1)
        def _finalize():
            x_norm = _l2n(acc_ref[...] * inv_n)                         # embedding_key == 'mean'
            c_norm = _l2n(cls_ref[0].astype(jnp.float32))               # (ppt, D) selected texts
            # torch: similarity = (c_norm @ x_norm.T).T  ==  contract last dims
            sim = lax.dot_general(x_norm, c_norm, (((1,), (1,)), ((), ())),
                                  preferred_element_type=jnp.float32)   # (tb, ppt)
            xnorm_ref[...] = x_norm
            tb = sim.shape[0]
            if simw > ppt:   # lane-dense similarity slab (sliced to ppt in the wrapper)
                sim_ref[...] = jnp.concatenate(
                    [sim, jnp.zeros((tb, simw - ppt), jnp.float32)], axis=1)
            else:
                sim_ref[...] = sim
            # compute_multi_prompt: weights only sim[:, 0] / sim[:, 1]; K=2 combination as VPU FMAs
            w0 = sim[:, 0:1, None]                                      # (tb, 1, 1)
            w1 = sim[:, 1:2, None]
            k0 = ep_ref[0, 0, 0:L, :].astype(jnp.float32)               # (L, D)
            k1 = ep_ref[0, 0, L:two_l, :].astype(jnp.float32)
            v0 = ep_ref[0, qv0, hv0 * L:(hv0 + 1) * L, :].astype(jnp.float32)
            v1 = ep_ref[0, qv1, hv1 * L:(hv1 + 1) * L, :].astype(jnp.float32)
            a0 = jnp.concatenate([k0, v0], axis=0)                      # (2L, D)  key|value, p'=0
            a1 = jnp.concatenate([k1, v1], axis=0)                      # (2L, D)  key|value, p'=1
            bp_ref[...] = w0 * a0[None] + w1 * a1[None]                 # one dense (tb,2L,D) store

    return kernel


def _vmem_budget_bytes():
    # Size tiles from the real chip when possible; fall back to a v7x-safe (64 MiB VMEM) budget.
    try:
        cap = pltpu.get_tpu_info().vmem_capacity_bytes
    except Exception:
        cap = 64 * 2 ** 20
    return max(24 * 2 ** 20, min(int(cap * 0.6), 80 * 2 ** 20))


def _pick_tiles(B, N, D, x_itemsize, *, ppt, two_l, simw, budget_bytes):
    """Pick (batch tile, sequence tile) so the whole pipelined footprint fits the VMEM budget."""
    def footprint(tb, tn):
        x_db = 2 * tb * tn * D * x_itemsize              # double-buffered x_embed blocks
        x_f32 = tb * tn * D * 4                          # transient f32 upcast of one block
        acc = tb * D * 4                                 # (tb, D) accumulator scratch
        cls_db = 2 * ppt * D * 4                         # class-text group block (x2)
        ep_db = 2 * ppt * two_l * D * 4                  # prompt group block (x2)
        out_db = 2 * (tb * simw * 4 + tb * D * 4 + tb * two_l * D * 4)
        return x_db + x_f32 + acc + cls_db + ep_db + out_db + (2 << 20)   # + compiler slack

    # batch tiles: multiples of 8 dividing B (sublane rule on 2-D output blocks), else B itself
    tb_cands = [t for t in range(8, B + 1, 8) if B % t == 0] or [B]
    # sequence tiles: full-N block (always layout-legal) and multiples of 8 below it
    if N <= 8:
        tn_cands = [N]
    else:
        tn_cands = sorted({t for t in (8, 16, 32, 64, 128, 256) if t <= min(N, 256)})
        if N <= 256:
            tn_cands.append(N)
        tn_cands = sorted(set(tn_cands))

    feasible = [(tb, tn) for tb in tb_cands for tn in tn_cands
                if footprint(tb, tn) <= budget_bytes]
    if not feasible:
        feasible = [(min(tb_cands), min(tn_cands))]
    # prefer >= 2 batch-grid steps so the "parallel" axis can shard across v7x's two TensorCores
    pref = [(tb, tn) for (tb, tn) in feasible if B // tb >= 2]
    if B >= 16 and pref:
        feasible = pref
    tb, tn = max(feasible, key=lambda p: (p[0] * p[1] * D * x_itemsize, p[1]))
    return tb, tn, footprint(tb, tn)


def eprompt_main(major, x_embed, class_g, ep_g, *, length, ppt):
    B, N, D = x_embed.shape
    two_l = ep_g.shape[2]
    L = length
    simw = ((ppt + 127) // 128) * 128                    # lane-dense similarity slab width
    budget = _vmem_budget_bytes()
    tb, tn, fp = _pick_tiles(B, N, D, jnp.dtype(x_embed.dtype).itemsize,
                             ppt=ppt, two_l=two_l, simw=simw, budget_bytes=budget)
    nb = B // tb
    nn = pl.cdiv(N, tn)
    needs_mask = (tn < N) and (N % tn != 0)

    kernel = _make_main_kernel(N, tn, L, ppt, simw, needs_mask)
    out_shapes = (jax.ShapeDtypeStruct((B, simw), jnp.float32),
                  jax.ShapeDtypeStruct((B, D), jnp.float32),
                  jax.ShapeDtypeStruct((B, two_l, D), jnp.float32))
    grid_spec = pltpu.PrefetchScalarGridSpec(
        num_scalar_prefetch=1,
        grid=(nb, nn),                                   # batch = parallel, sequence = reduction
        in_specs=[pl.BlockSpec((tb, tn, D), lambda b, n, m: (b, n, 0)),
                  # data-dependent group gather, driven by the prefetched `major` scalar:
                  pl.BlockSpec((1, ppt, D), lambda b, n, m: (m[0, 0], 0, 0)),
                  pl.BlockSpec((1, ppt, two_l, D), lambda b, n, m: (m[0, 0], 0, 0, 0))],
        out_specs=(pl.BlockSpec((tb, simw), lambda b, n, m: (b, 0)),
                   pl.BlockSpec((tb, D), lambda b, n, m: (b, 0)),
                   pl.BlockSpec((tb, two_l, D), lambda b, n, m: (b, 0, 0))),
        scratch_shapes=[pltpu.VMEM((tb, D), jnp.float32)])
    vmem_limit = int(min(budget + (16 << 20), max(32 << 20, fp + (8 << 20))))
    return pl.pallas_call(
        kernel,
        out_shape=out_shapes,
        grid_spec=grid_spec,
        compiler_params=pltpu.CompilerParams(
            dimension_semantics=("parallel", "arbitrary"),
            vmem_limit_bytes=vmem_limit),
    )(major, x_embed, class_g, ep_g)


# ---------------------------------------------------------------------------
# Forward (eval / inference branch, prompt_pool=True, use_prefix_tune_for_e_prompt=True,
#          embedding_key='mean', top_k=1)
# ---------------------------------------------------------------------------
def eprompt_forward(params, x_embed, text_features_class, text_features_task,
                    cls_features_task, *, layer_num=0, top_k=1,
                    prompts_per_task=4, num_heads=4, length=4,
                    x_dtype=jnp.bfloat16):
    assert top_k == 1, "only top_k=1 (argmax + majority vote) is implemented"
    B, N, D = x_embed.shape
    ppt, H, L = prompts_per_task, num_heads, length
    hd = D // H
    e_p = params[f'e_p_{layer_num}']                        # (pool, 2L, D)
    pool = e_p.shape[0]
    G = pool // ppt                                         # number of task groups

    # bf16 by default for the dominant (B*N*D) x_embed read; in-kernel math stays f32.
    if x_dtype is not None and x_embed.dtype != x_dtype:
        x_embed = x_embed.astype(x_dtype)

    # kernel 1: task similarity + majority vote (f32 inputs: integer result must not flip);
    # `major` feeds kernel 2's index_maps directly via scalar prefetch.
    major, prompt_idx = select_task(text_features_task.astype(jnp.float32),
                                    cls_features_task.astype(jnp.float32), top_k=top_k)

    # contiguous (free) group-major views so the selected group is a clean BlockSpec block
    class_g = text_features_class.astype(jnp.float32).reshape(G, ppt, D)
    ep_g = e_p.astype(jnp.float32).reshape(G, ppt, 2 * L, D)

    sim_pad, x_norm, bp = eprompt_main(major, x_embed, class_g, ep_g, length=L, ppt=ppt)

    out = {}
    out['prompt_idx'] = prompt_idx                           # (B, top_k)
    out['similarity'] = sim_pad[:, :ppt]                     # (B, ppt)  lane-padded slab, sliced
    out['x_embed_norm'] = x_norm                             # (B, D)
    out['batched_prompt'] = bp.reshape(B, 2, L, H, hd)       # contiguous reshape (free)
    return out


# ---------------------------------------------------------------------------
# Pure-JAX literal translation of the PyTorch eval branch (for verification only)
# ---------------------------------------------------------------------------
def _reference_forward(params, x_embed, text_features_class, text_features_task,
                       cls_features_task, *, layer_num, top_k, prompts_per_task,
                       num_heads, length):
    B, N, D = x_embed.shape
    ppt, H, L = prompts_per_task, num_heads, length
    hd = D // H
    T = text_features_task.shape[0]
    x_embed_mean = jnp.mean(x_embed, axis=1)
    pk_norm = _l2n(text_features_task)
    xcls_norm = _l2n(cls_features_task)
    sim2 = jnp.matmul(xcls_norm, pk_norm.T, precision=lax.Precision.HIGHEST)   # (B, T)
    idx = jnp.argmax(sim2, axis=1)
    counts = jnp.sum(idx[:, None] == jnp.arange(T)[None, :], axis=0)
    major = jnp.argmax(counts)
    e_p = params[f'e_p_{layer_num}']
    start = major * ppt
    prompt_token = lax.dynamic_slice(e_p, (start, 0, 0), (ppt, 2 * L, D))
    tfc = lax.dynamic_slice(text_features_class, (start, 0), (ppt, D))
    c_norm = _l2n(tfc)
    x_norm = _l2n(x_embed_mean)
    similarity = jnp.matmul(x_norm, c_norm.T, precision=lax.Precision.HIGHEST)  # (B, ppt)
    bp = jnp.broadcast_to(prompt_token[None], (B, ppt, 2 * L, D))
    pk = jnp.transpose(bp.reshape(B, 2, ppt, L, H, hd), (1, 4, 0, 2, 3, 5))
    k_l, v_l = pk[0], pk[1]
    new_k = jnp.zeros((H, B, L, hd), jnp.float32)
    new_v = jnp.zeros((H, B, L, hd), jnp.float32)
    for h in range(H):
        for p in range(2):
            new_k = new_k.at[h].add(k_l[h][:, p] * similarity[:, p][:, None, None])
            new_v = new_v.at[h].add(v_l[h][:, p] * similarity[:, p][:, None, None])
    nbp = jnp.transpose(jnp.stack([new_k, new_v], 0), (2, 0, 3, 1, 4))    # (B, 2, L, H, hd)
    return {'prompt_idx': jnp.broadcast_to(major, (B, top_k)),
            'similarity': similarity, 'x_embed_norm': x_norm, 'batched_prompt': nbp}


if __name__ == "__main__":
    # Small config consistent with EPrompt.__init__
    length = 4
    embed_dim = 32
    num_heads = 4
    num_tasks = 3
    prompts_per_task = 4
    pool_size = num_tasks * prompts_per_task
    top_k = 1
    B, N = 2, 8

    key = jax.random.PRNGKey(0)
    k1, k2, k3, k4, k5, k6 = jax.random.split(key, 6)

    params = {
        'e_p_0': jax.random.uniform(k1, (pool_size, 2 * length, embed_dim),
                                    jnp.float32, -1.0, 1.0),
        # prompt_key exists in the module but is unused on this forward path
        'prompt_key': jax.random.uniform(k2, (pool_size, embed_dim),
                                         jnp.float32, -1.0, 1.0),
    }
    x_embed = jax.random.normal(k3, (B, N, embed_dim), jnp.float32)
    text_features_class = jax.random.normal(k4, (pool_size, embed_dim), jnp.float32)
    text_features_task = jax.random.normal(k5, (num_tasks, embed_dim), jnp.float32)
    cls_features_task = jax.random.normal(k6, (B, embed_dim), jnp.float32)

    out = eprompt_forward(params, x_embed, text_features_class, text_features_task,
                          cls_features_task, layer_num=0, top_k=top_k,
                          prompts_per_task=prompts_per_task, num_heads=num_heads,
                          length=length)                       # default bf16 x_embed read path
    jax.block_until_ready(out)

    # feed the reference the same bf16-rounded x_embed so the comparison isolates kernel math
    x_embed_ref = x_embed.astype(jnp.bfloat16).astype(jnp.float32)
    ref = _reference_forward(params, x_embed_ref, text_features_class, text_features_task,
                             cls_features_task, layer_num=0, top_k=top_k,
                             prompts_per_task=prompts_per_task, num_heads=num_heads,
                             length=length)

    assert out['batched_prompt'].shape == (B, 2, length, num_heads, embed_dim // num_heads)
    assert out['similarity'].shape == (B, prompts_per_task)
    assert out['x_embed_norm'].shape == (B, embed_dim)
    assert out['prompt_idx'].shape == (B, top_k)
    assert jnp.array_equal(out['prompt_idx'].astype(jnp.int32),
                           ref['prompt_idx'].astype(jnp.int32))
    assert jnp.allclose(out['similarity'], ref['similarity'], atol=2e-3, rtol=2e-3)
    assert jnp.allclose(out['x_embed_norm'], ref['x_embed_norm'], atol=2e-3, rtol=2e-3)
    assert jnp.allclose(out['batched_prompt'], ref['batched_prompt'], atol=2e-3, rtol=2e-3)
    print("KERNEL_OK")
</pallas_src>

<mosaic_0001>
module attributes {stable_mosaic.version = 11 : i64} {
  func.func @_select_task_kernel(%arg0: i32, %arg1: memref<3x32xf32, #tpu.memory_space<vmem>>, %arg2: memref<2x32xf32, #tpu.memory_space<vmem>>, %arg3: memref<1x1xi32, #tpu.memory_space<vmem>>, %arg4: memref<2x1xi32, #tpu.memory_space<vmem>>) attributes {dimension_semantics = [#tpu.dimension_semantics<arbitrary>], iteration_bounds = array<i64: 1>, scalar_prefetch = 0 : i64, scratch_operands = 0 : i64, tpu.core_type = #tpu.core_type<tc>, window_params = [{pipeline_mode = #tpu.pipeline_mode<synchronous>, transform_indices = @transform_0, window_bounds = array<i64: 3, 32>}, {pipeline_mode = #tpu.pipeline_mode<synchronous>, transform_indices = @transform_1, window_bounds = array<i64: 2, 32>}, {pipeline_mode = #tpu.pipeline_mode<synchronous>, transform_indices = @transform_2, window_bounds = array<i64: 1, 1>}, {pipeline_mode = #tpu.pipeline_mode<synchronous>, transform_indices = @transform_3, window_bounds = array<i64: 2, 1>}]} {
    %c0 = arith.constant 0 : index
    %c0_0 = arith.constant 0 : index
    %0 = vector.load %arg1[%c0, %c0_0] : memref<3x32xf32, #tpu.memory_space<vmem>>, vector<3x32xf32>
    %1 = arith.mulf %0, %0 : vector<3x32xf32>
    %cst = arith.constant dense<0.000000e+00> : vector<3xf32>
    %2 = vector.multi_reduction <add>, %1, %cst [1] : vector<3x32xf32> to vector<3xf32>
    %3 = vector.shape_cast %2 : vector<3xf32> to vector<3x1xf32>
    %cst_1 = arith.constant 9.99999996E-13 : f32
    %4 = vector.broadcast %cst_1 : f32 to vector<3x1xf32>
    %5 = arith.maximumf %3, %4 : vector<3x1xf32>
    %6 = math.rsqrt %5 : vector<3x1xf32>
    %7 = vector.broadcast %6 : vector<3x1xf32> to vector<3x32xf32>
    %8 = arith.mulf %0, %7 : vector<3x32xf32>
    %c0_2 = arith.constant 0 : index
    %c0_3 = arith.constant 0 : index
    %9 = vector.load %arg2[%c0_2, %c0_3] : memref<2x32xf32, #tpu.memory_space<vmem>>, vector<2x32xf32>
    %10 = arith.mulf %9, %9 : vector<2x32xf32>
    %cst_4 = arith.constant dense<0.000000e+00> : vector<2xf32>
    %11 = vector.multi_reduction <add>, %10, %cst_4 [1] : vector<2x32xf32> to vector<2xf32>
    %12 = vector.shape_cast %11 : vector<2xf32> to vector<2x1xf32>
    %cst_5 = arith.constant 9.99999996E-13 : f32
    %13 = vector.broadcast %cst_5 : f32 to vector<2x1xf32>
    %14 = arith.maximumf %12, %13 : vector<2x1xf32>
    %15 = math.rsqrt %14 : vector<2x1xf32>
    %16 = vector.broadcast %15 : vector<2x1xf32> to vector<2x32xf32>
    %17 = arith.mulf %9, %16 : vector<2x32xf32>
    %cst_6 = arith.constant dense<0.000000e+00> : vector<2x3xf32>
    %18 = tpu.matmul %17, %8, %cst_6 {dimension_numbers = #tpu.dot_dimension_numbers<[1], [1], [0], [0], [0, 0, 1, 0], [], []>} : vector<2x32xf32>, vector<3x32xf32>, vector<2x3xf32> -> vector<2x3xf32>
    %19 = tpu.iota {dimensions = array<i32: 1>} : vector<2x3xi32>
    %20 = arith.sitofp %19 : vector<2x3xi32> to vector<2x3xf32>
    %cst_7 = arith.constant dense<0xFF800000> : vector<2xf32>
    %21 = vector.multi_reduction <maximumf>, %18, %cst_7 [1] : vector<2x3xf32> to vector<2xf32>
    %22 = vector.shape_cast %21 : vector<2xf32> to vector<2x1xf32>
    %23 = vector.broadcast %22 : vector<2x1xf32> to vector<2x3xf32>
    %24 = arith.cmpf oeq, %18, %23 : vector<2x3xf32>
    %cst_8 = arith.constant 3.000000e+00 : f32
    %25 = vector.broadcast %cst_8 : f32 to vector<2x3xf32>
    %26 = arith.select %24, %20, %25 : vector<2x3xi1>, vector<2x3xf32>
    %cst_9 = arith.constant dense<0x7F800000> : vector<2xf32>
    %27 = vector.multi_reduction <minimumf>, %26, %cst_9 [1] : vector<2x3xf32> to vector<2xf32>
    %28 = vector.shape_cast %27 : vector<2xf32> to vector<2x1xf32>
    %29 = vector.broadcast %28 : vector<2x1xf32> to vector<2x3xf32>
    %30 = arith.cmpf oeq, %20, %29 : vector<2x3xf32>
    %31 = arith.extui %30 : vector<2x3xi1> to vector<2x3xi32>
    %32 = arith.sitofp %31 : vector<2x3xi32> to vector<2x3xf32>
    %cst_10 = arith.constant dense<0.000000e+00> : vector<3xf32>
    %33 = vector.multi_reduction <add>, %32, %cst_10 [0] : vector<2x3xf32> to vector<3xf32>
    %34 = vector.shape_cast %33 : vector<3xf32> to vector<1x3xf32>
    %35 = tpu.iota {dimensions = array<i32: 1>} : vector<1x3xi32>
    %36 = arith.sitofp %35 : vector<1x3xi32> to vector<1x3xf32>
    %cst_11 = arith.constant dense<0xFF800000> : vector<1xf32>
    %37 = vector.multi_reduction <maximumf>, %34, %cst_11 [1] : vector<1x3xf32> to vector<1xf32>
    %38 = vector.shape_cast %37 : vector<1xf32> to vector<1x1xf32>
    %39 = vector.broadcast %38 : vector<1x1xf32> to vector<1x3xf32>
    %40 = arith.cmpf oeq, %34, %39 : vector<1x3xf32>
    %cst_12 = arith.constant 3.000000e+00 : f32
    %41 = vector.broadcast %cst_12 : f32 to vector<1x3xf32>
    %42 = arith.select %40, %36, %41 : vector<1x3xi1>, vector<1x3xf32>
    %cst_13 = arith.constant dense<0x7F800000> : vector<1xf32>
    %43 = vector.multi_reduction <minimumf>, %42, %cst_13 [1] : vector<1x3xf32> to vector<1xf32>
    %44 = vector.shape_cast %43 : vector<1xf32> to vector<1x1xf32>
    %45 = arith.fptosi %44 : vector<1x1xf32> to vector<1x1xi32>
    %c0_14 = arith.constant 0 : index
    %c0_15 = arith.constant 0 : index
    %46 = vector.load %arg3[%c0_14, %c0_15] : memref<1x1xi32, #tpu.memory_space<vmem>>, vector<1x1xi32>
    tpu.vector_store %arg3[%c0_14, %c0_15], %45 {strides = array<i32>} : memref<1x1xi32, #tpu.memory_space<vmem>>, vector<1x1xi32>,
    %47 = vector.shape_cast %45 : vector<1x1xi32> to vector<1x1xi32>
    %48 = vector.broadcast %47 : vector<1x1xi32> to vector<2x1xi32>
    %c0_16 = arith.constant 0 : index
    %c0_17 = arith.constant 0 : index
    %49 = vector.load %arg4[%c0_16, %c0_17] : memref<2x1xi32, #tpu.memory_space<vmem>>, vector<2x1xi32>
    tpu.vector_store %arg4[%c0_16, %c0_17], %48 {strides = array<i32>} : memref<2x1xi32, #tpu.memory_space<vmem>>, vector<2x1xi32>,
    return
  }
  func.func @transform_0(%arg0: i32) -> (i32, i32) {
    %c0_i32 = arith.constant 0 : i32
    %c0_i32_0 = arith.constant 0 : i32
    %c0_i32_1 = arith.constant 0 : i32
    return %c0_i32, %c0_i32_0 : i32, i32
  }
  func.func @transform_1(%arg0: i32) -> (i32, i32) {
    %c0_i32 = arith.constant 0 : i32
    %c0_i32_0 = arith.constant 0 : i32
    %c0_i32_1 = arith.constant 0 : i32
    return %c0_i32, %c0_i32_0 : i32, i32
  }
  func.func @transform_2(%arg0: i32) -> (i32, i32) {
    %c0_i32 = arith.constant 0 : i32
    %c0_i32_0 = arith.constant 0 : i32
    %c0_i32_1 = arith.constant 0 : i32
    return %c0_i32, %c0_i32_0 : i32, i32
  }
  func.func @transform_3(%arg0: i32) -> (i32, i32) {
    %c0_i32 = arith.constant 0 : i32
    %c0_i32_0 = arith.constant 0 : i32
    %c0_i32_1 = arith.constant 0 : i32
    return %c0_i32, %c0_i32_0 : i32, i32
  }
}

</mosaic_0001>

<bundles_post_ra>
// kernel: tpu_custom_call.1
= control target key start
LH: loop header
LB: loop body
LE: loop exit
PB: predicated region body
PF: predicated region fallthrough
CT: control target
= control target key end

     0   :  { %9 = vsyncpa [#allocation3], 0  ;;  %s301_s0 = inlined_call_operand.hbm [shape: f32[3,32], index: 0, kind: input, shape index: {}]   ;;  %s302_s1 = inlined_call_operand.vmem [shape: f32[2,32], index: 1, kind: input, shape index: {}]   ;;  %s303_s2 = inlined_call_operand.hbm [shape: s32[1,1], index: 2, kind: output, shape index: {0}]   ;;  %s304_s3 = inlined_call_operand.vmem [shape: s32[2,1], index: 3, kind: output, shape index: {1}]  }
   0x1   :  { %10 = vsyncpa [#allocation4], 0  ;;  %s244_s12 = smov [#allocation2]   ;;  %s196_s16 = scalar_lea.hbm %s301_s0, 64 }
   0x2   :  { %s17_s13 = sshll.u32 %s244_s12, 4  ;;  %p197_p0 = scmp.ne.s32.totalorder %s301_s0, %s196_s16  ;;  %s18_s13 = int_to_ptr.vmem [resolvable:$true] %s17_s13 }
   0x3   :  { %p200_p1 = scmp.lt.u32.totalorder %s196_s16, %s301_s0 }
   0x5   :  { %p202_p2 = pnand %p200_p1, %p197_p0 }
   0x7   :  { %205 = shalt.err (!%p202_p2)
}
   0x8   :  { %s206_s21 = scalar_lea.vmem %s18_s13, 64  ;;  %p211_p4 = scmp.lt.s32.totalorder %s18_s13, %s18_s13 }
   0x9   :  { %p207_p3 = scmp.ne.s32.totalorder %s18_s13, %s206_s21  ;;  %p212_p5 = scmp.lt.s32.totalorder %s206_s21, %s206_s21 }
   0xb   :  { %p213_p6 = por %p212_p5, %p211_p4 }
   0xd   :  { %p214_p7 = pnand %p213_p6, %p207_p3 }
   0xf   :  { %217 = shalt.err (!%p214_p7)
}
  0x10   :  { %20 = dma.hbm_to_vmem [thread:$0]  %s301_s0, 64, %s18_s13, [#allocation3]  }
  0x11   :  { %240 = dma.done.wait [#allocation3], 64  }
  0x12   :  { %241 = vsyncadd [#allocation3], 4294967232  ;;  %v26_v0 = vld [vmem:[#allocation2] sm:$0x7]  ;;  %vm28_vm0 = vcmask 256000   ;;  %vm37_vm1 = vcmask 254976   ;;  %v121_v18 = vlaneseq }
  0x13   :  { %v35_v1 = vld [vmem:[%s302_s1] sm:$0x3]  ;;  %v27_v2 = vmul.f32 %v26_v0, %v26_v0  ;;  %v245_v6 = vmov 0.0   ;;  %vm246_vm2 = vmmov 0   ;;  %vm44_vm3 = vcmask 261120   ;;  %s247_s0 = smov [#allocation5]  }
  0x14   :  { %v36_v3 = vmul.f32 %v35_v1, %v35_v1  ;;  %181 = vmatprep.subr.mxu0 %v245_v6  ;;  %183 = vmatprep.mubr.msk.f32.mxu0 %vm246_vm2, %v245_v6  ;;  %vm124_vm4 = vcmask 17408   ;;  %v122_v19 = vand.u32 127, %v121_v18  ;;  %vm143_vm7 = vcmask 23552   ;;  %s163_s1 = sshll.u32 %s247_s0, 4  ;;  %s164_s1 = int_to_ptr.vmem [resolvable:$true] %s163_s1 }
  0x15   :  { %v29_v4 = vsel %vm28_vm0, %v27_v2, 0.0  ;;  %vm155_vm9 = vcmask 1024   ;;  %vm153_vm10 = vcmask 0   ;;  %s218_s28 = scalar_lea.vmem %s164_s1, 16  ;;  %s222_s29 = scalar_lea.vmem %s164_s1, 32 }
  0x16   :  { %30 = vadd.xlane.f32.xlu0 %v29_v4  ;;  %v38_v5 = vsel %vm37_vm1, %v36_v3, 0.0  ;;  %v123_v20 = vcvt.s32.f32 %v122_v19  ;;  %p219_p8 = scmp.ne.s32.totalorder %s164_s1, %s218_s28  ;;  %p223_p9 = scmp.lt.s32.totalorder %s164_s1, %s164_s1 }
  0x17   :  { %p224_p10 = scmp.lt.s32.totalorder %s222_s29, %s218_s28 }
  0x19   :  { %p225_p11 = por %p224_p10, %p223_p9 }
  0x1a   :  { %39 = vadd.xlane.f32.xlu0 %v38_v5 }
  0x1b   :  { %p226_p12 = pnand %p225_p11, %p219_p8 }
  0xa3   :  { %v31_v7 = vpop.xlane.xlu0 %30 }
  0xa4   :  { %v32_v8 = vmax.f32 %v31_v7, 1e-12 }
  0xa6   :  { %192 = vrsqrt.f32 %v32_v8 }
  0xa7   :  { %v40_v9 = vpop.xlane.xlu0 %39 }
  0xa8   :  { %v41_v10 = vmax.f32 %v40_v9, 1e-12 }
  0xaa   :  { %194 = vrsqrt.f32 %v41_v10 }
  0xb0   :  { %v193_v11 = vpop.eup %192 }
  0xb1   :  { %v34_v12 = vmul.f32 %v193_v11, %v26_v0 }
  0xb3   :  { %182 = vmatpush3.xpose.msk.msra.mxu0 %vm44_vm3, %v34_v12 }
  0xb4   :  { %v195_v13 = vpop.eup %194 }
  0xb5   :  { %v43_v14 = vmul.f32 %v195_v13, %v35_v1 }
  0xb7   :  { %184 = vmatmul.mubr.msk.f32.vlgmr.msra.gmra.mrb[0].mxu0 %vm44_vm3, %v43_v14 }
 0x18a   :  { %v117_v15 = vpop.f32.mrb[0].mxu0 }
 0x18b   :  { %v185_v16 = vpop.f32.mrb[1].mxu0  ;;  %v125_v17 = vsel %vm124_vm4, %v117_v15, -inf }
 0x18c   :  { %126 = vmax.xlane.f32.xlu1 %v125_v17 }
 0x219   :  { %v127_v21 = vpop.xlane.xlu1 %126 }
 0x21a   :  { %vm128_vm5 = vcmp.eq.f32.partialorder %v117_v15, %v127_v21 }
 0x21b   :  { %v129_v22 = vsel %vm128_vm5, %v123_v20, 3.0 }
 0x21c   :  { %v130_v23 = vsel %vm124_vm4, %v129_v22, inf }
 0x21d   :  { %131 = vmin.xlane.f32.xlu1 %v130_v23 }
 0x2aa   :  { %v132_v24 = vpop.xlane.xlu1 %131 }
 0x2ab   :  { %vm133_vm6 = vcmp.eq.f32.partialorder %v123_v20, %v132_v24 }
 0x2ac   :  { %v178_v25 = vsel %vm133_vm6, 1.0, %v245_v6 }
 0x2ad   :  { %v136_v26 = vsel %vm124_vm4, %v178_v25, 0.0 }
 0x2ae   :  { %v137_v27 = vrot.slane %v136_v26, 4 }
 0x2b0   :  { %v138_v28 = vadd.f32 %v137_v27, %v136_v26 }
 0x2b2   :  { %v139_v29 = vrot.slane %v138_v28, 2 }
 0x2b4   :  { %v140_v30 = vadd.f32 %v139_v29, %v138_v28 }
 0x2b6   :  { %v141_v31 = vrot.slane %v140_v30, 1 }
 0x2b8   :  { %v142_v32 = vadd.f32 %v141_v31, %v140_v30 }
 0x2ba   :  { %v144_v33 = vsel %vm143_vm7, %v142_v32, -inf }
 0x2bb   :  { %145 = vmax.xlane.f32.xlu0 %v144_v33 }
 0x348   :  { %v146_v34 = vpop.xlane.xlu0 %145 }
 0x349   :  { %vm147_vm8 = vcmp.eq.f32.partialorder %v142_v32, %v146_v34 }
 0x34a   :  { %v148_v35 = vsel %vm147_vm8, %v123_v20, 3.0 }
 0x34b   :  { %v149_v36 = vsel %vm143_vm7, %v148_v35, inf }
 0x34c   :  { %150 = vmin.xlane.f32.xlu1 %v149_v36 }
 0x3d9   :  { %v151_v37 = vpop.xlane.xlu1 %150 }
 0x3da   :  { %v186_v38 = vtrunc.f32 %v151_v37 }
 0x3dc   :  { %v187_v39 = vcvt.f32.s32 %v186_v38 }
 0x3de   :  { %156 = vst.msk [vmem:[%s304_s3] sm:$0x3] %vm155_vm9, %v187_v39 }
 0x3df   :  { %154 = vst.msk [vmem:[#allocation5] sm:$0x1] %vm153_vm10, %v187_v39 }
 0x3e0   :  { %229 = shalt.err (!%p226_p12)
}
 0x3e1   :  { %s230_s5 = scalar_lea.hbm %s303_s2, 16 }
 0x3e2   :  { %p231_p13 = scmp.ne.s32.totalorder %s303_s2, %s230_s5  ;;  %p234_p0 = scmp.lt.u32.totalorder %s230_s5, %s303_s2 }
 0x3e4   :  { %p236_p1 = pnand %p234_p0, %p231_p13 }
 0x3e6   :  { %239 = shalt.err (!%p236_p1)
}
 0x3e7   :  { %166 = dma.vmem_to_hbm [thread:$0]  %s164_s1, 16, %s303_s2, [#allocation4]  }
 0x3e8   :  { %242 = dma.done.wait [#allocation4], 16  }
 0x3e9   :  { %243 = vsyncadd [#allocation4], 4294967280 }
 0x3ea   :  { %174 = vsyncpa [#allocation3], 1 }
 0x3eb   :  { %175 = vsyncpa [#allocation4], 1 }

</bundles_post_ra>
